<compile_context>
chip_gen: v7x
topology: tpu7x:2x2x1
jax: 0.10.0
libtpu: 0.0.40
codegen_flags: <defaults>
</compile_context>

<pallas_src>
import jax
import jax.numpy as jnp
from jax.experimental import pallas as pl
from jax.experimental.pallas import tpu as pltpu


def _round_up(x, m):
    return (x + m - 1) // m * m


def bernoulli_head_kernel(x_ref, w_ref, b_ref, logits_ref):
    # logits = x @ W + b   (MXU matmul with f32 accumulation, f32 bias add)
    logits = jnp.dot(x_ref[...], w_ref[...], preferred_element_type=jnp.float32)
    logits = logits + b_ref[...].astype(jnp.float32)        # (TM, Dp) + (1, Dp)
    logits_ref[...] = logits.astype(logits_ref.dtype)


def bernoulli_head_forward(x, w, b, *, block_b=256):
    """logits of the Bernoulli head: x @ W + b.

    x: (B, Din), w: (Din, Dout) (transposed vs. nn.Linear storage), b: (Dout,).
    Returns (B, Dout) logits; ModBernoulli(logits=...) is parameterized by this.
    """
    B, Din = x.shape
    Din_w, Dout = w.shape
    assert Din_w == Din

    # Lane-dense output: pad Dout up to a multiple of 128 so output stores are
    # unmasked full-lane vst (biggest single lever for small kernels).
    Dout_p = _round_up(max(Dout, 128), 128)

    # Batch tiling: sublane-aligned row tile; grid over batch for pipelining /
    # megacore.  For tiny B this degenerates to a single grid step.
    TM = min(block_b, _round_up(B, 8))
    B_p = _round_up(B, TM)

    x_p = x if B_p == B else jnp.pad(x, ((0, B_p - B), (0, 0)))
    if Dout_p != Dout:
        w_p = jnp.pad(w, ((0, 0), (0, Dout_p - Dout)))
        b_p = jnp.pad(b.reshape(1, Dout), ((0, 0), (0, Dout_p - Dout)))
    else:
        w_p = w
        b_p = b.reshape(1, Dout)

    grid = (B_p // TM,)

    logits_p = pl.pallas_call(
        bernoulli_head_kernel,
        out_shape=jax.ShapeDtypeStruct((B_p, Dout_p), x.dtype),
        grid_spec=pltpu.PrefetchScalarGridSpec(
            num_scalar_prefetch=0,
            grid=grid,
            in_specs=[
                pl.BlockSpec((TM, Din), lambda i: (i, 0)),      # x tile, pipelined
                pl.BlockSpec((Din, Dout_p), lambda i: (0, 0)),  # W resident
                pl.BlockSpec((1, Dout_p), lambda i: (0, 0)),    # bias row resident
            ],
            out_specs=pl.BlockSpec((TM, Dout_p), lambda i: (i, 0)),
        ),
        compiler_params=pltpu.CompilerParams(
            dimension_semantics=("parallel",),
        ),
    )(x_p, w_p, b_p)

    return logits_p[:B, :Dout]


# --- ModBernoulli distribution methods (lazy consumers of the logits; plain
#     JAX, outside the kernel — matches torch.distributions.Bernoulli math) ---
def bernoulli_log_probs(logits, actions):
    # log p(a) = a*log(sigmoid(l)) + (1-a)*log(1-sigmoid(l)); summed per sample.
    lp = -jax.nn.softplus(-logits) * actions - jax.nn.softplus(logits) * (1.0 - actions)
    return lp.reshape(actions.shape[0], -1).sum(-1)[:, None]


def bernoulli_entropy(logits):
    p = jax.nn.sigmoid(logits)
    ent = jax.nn.softplus(-logits) * p + jax.nn.softplus(logits) * (1.0 - p)
    return ent.sum(-1)


def bernoulli_mode(logits):
    return (logits > 0.0).astype(jnp.float32)   # probs > 0.5  <=>  logits > 0


def init_params(key, num_inputs, num_outputs, dtype=jnp.float32):
    """Synthetic init matching init_layer(nn.Linear(...)) parameter shapes.

    Weight is stored transposed as (num_inputs, num_outputs) for x @ W; bias
    is zeros(num_outputs).
    """
    scale = 1.0 / jnp.sqrt(jnp.array(num_inputs, dtype))
    w = jax.random.normal(key, (num_inputs, num_outputs), dtype) * scale
    b = jnp.zeros((num_outputs,), dtype)
    return w, b


if __name__ == "__main__":
    B, num_inputs, num_outputs = 8, 32, 16

    key = jax.random.PRNGKey(0)
    kx, kp = jax.random.split(key)
    x = jax.random.normal(kx, (B, num_inputs), jnp.float32)
    w, b = init_params(kp, num_inputs, num_outputs)

    forward = jax.jit(bernoulli_head_forward)
    logits = forward(x, w, b)
    jax.block_until_ready(logits)

    # Reference check in plain JAX (same semantics as BernoulliHead.forward's
    # linear layer producing the distribution logits).
    ref_logits = x @ w + b[None, :]
    assert logits.shape == (B, num_outputs)
    assert jnp.allclose(logits, ref_logits, atol=1e-5, rtol=1e-5)

    # Sanity-check the lazy distribution helpers against closed forms.
    actions = (jax.random.uniform(kx, (B, num_outputs)) > 0.5).astype(jnp.float32)
    lp = bernoulli_log_probs(ref_logits, actions)
    ent = bernoulli_entropy(ref_logits)
    mode = bernoulli_mode(ref_logits)
    assert lp.shape == (B, 1) and ent.shape == (B,) and mode.shape == (B, num_outputs)

    print("KERNEL_OK")
</pallas_src>

<mosaic_0001>
module attributes {stable_mosaic.version = 11 : i64} {
  func.func @bernoulli_head_kernel(%arg0: i32, %arg1: memref<8x32xf32, #tpu.memory_space<vmem>>, %arg2: memref<32x128xf32, #tpu.memory_space<vmem>>, %arg3: memref<1x128xf32, #tpu.memory_space<vmem>>, %arg4: memref<8x128xf32, #tpu.memory_space<vmem>>) attributes {dimension_semantics = [#tpu.dimension_semantics<parallel>], iteration_bounds = array<i64: 1>, scalar_prefetch = 0 : i64, scratch_operands = 0 : i64, tpu.core_type = #tpu.core_type<tc>, window_params = [{transform_indices = @transform_0, window_bounds = array<i64: 8, 32>}, {pipeline_mode = #tpu.pipeline_mode<synchronous>, transform_indices = @transform_1, window_bounds = array<i64: 32, 128>}, {pipeline_mode = #tpu.pipeline_mode<synchronous>, transform_indices = @transform_2, window_bounds = array<i64: 1, 128>}, {transform_indices = @transform_3, window_bounds = array<i64: 8, 128>}]} {
    %c0 = arith.constant 0 : index
    %c0_0 = arith.constant 0 : index
    %0 = vector.load %arg1[%c0, %c0_0] : memref<8x32xf32, #tpu.memory_space<vmem>>, vector<8x32xf32>
    %c0_1 = arith.constant 0 : index
    %c0_2 = arith.constant 0 : index
    %1 = vector.load %arg2[%c0_1, %c0_2] : memref<32x128xf32, #tpu.memory_space<vmem>>, vector<32x128xf32>
    %cst = arith.constant dense<0.000000e+00> : vector<8x128xf32>
    %2 = tpu.matmul %0, %1, %cst {dimension_numbers = #tpu.dot_dimension_numbers<[1], [0], [0], [1], [0, 0, 1, 1], [], []>} : vector<8x32xf32>, vector<32x128xf32>, vector<8x128xf32> -> vector<8x128xf32>
    %c0_3 = arith.constant 0 : index
    %c0_4 = arith.constant 0 : index
    %3 = vector.load %arg3[%c0_3, %c0_4] : memref<1x128xf32, #tpu.memory_space<vmem>>, vector<1x128xf32>
    %4 = vector.broadcast %3 : vector<1x128xf32> to vector<8x128xf32>
    %5 = arith.addf %2, %4 : vector<8x128xf32>
    %c0_5 = arith.constant 0 : index
    %c0_6 = arith.constant 0 : index
    %6 = vector.load %arg4[%c0_5, %c0_6] : memref<8x128xf32, #tpu.memory_space<vmem>>, vector<8x128xf32>
    tpu.vector_store %arg4[%c0_5, %c0_6], %5 {strides = array<i32>} : memref<8x128xf32, #tpu.memory_space<vmem>>, vector<8x128xf32>,
    return
  }
  func.func @transform_0(%arg0: i32) -> (i32, i32) {
    %c0_i32 = arith.constant 0 : i32
    %c0_i32_0 = arith.constant 0 : i32
    return %arg0, %c0_i32 : i32, i32
  }
  func.func @transform_1(%arg0: i32) -> (i32, i32) {
    %c0_i32 = arith.constant 0 : i32
    %c0_i32_0 = arith.constant 0 : i32
    %c0_i32_1 = arith.constant 0 : i32
    return %c0_i32, %c0_i32_0 : i32, i32
  }
  func.func @transform_2(%arg0: i32) -> (i32, i32) {
    %c0_i32 = arith.constant 0 : i32
    %c0_i32_0 = arith.constant 0 : i32
    %c0_i32_1 = arith.constant 0 : i32
    return %c0_i32, %c0_i32_0 : i32, i32
  }
  func.func @transform_3(%arg0: i32) -> (i32, i32) {
    %c0_i32 = arith.constant 0 : i32
    %c0_i32_0 = arith.constant 0 : i32
    return %arg0, %c0_i32 : i32, i32
  }
}

</mosaic_0001>

<bundles_post_ra>
// kernel: bernoulli_head_forward.1
= control target key start
LH: loop header
LB: loop body
LE: loop exit
PB: predicated region body
PF: predicated region fallthrough
CT: control target
= control target key end

     0   :  { %v168_v3 = vmov 0.0|0.0   ;;  %vm169_vm0 = vmmov 0   ;;  %v170_v6 = vmov 0.0   ;;  %s222_s0 = inlined_call_operand.vmem [shape: f32[8,32], index: 0, kind: input, shape index: {}]   ;;  %s223_s1 = inlined_call_operand.vmem [shape: f32[32,128], index: 1, kind: input, shape index: {}]   ;;  %s224_s2 = inlined_call_operand.vmem [shape: f32[1,128], index: 2, kind: input, shape index: {}]   ;;  %s225_s3 = inlined_call_operand.hbm [shape: f32[8,128], index: 3, kind: output, shape index: {}]  }
   0x1   :  { %v16_v0 = vld [vmem:[%s223_s1] sm:$0xff]  ;;  %v17_v1 = vld [vmem:[%s223_s1 + $0x8] sm:$0xff]  ;;  %v18_v2 = vld [vmem:[%s223_s1 + $0x10] sm:$0xff]  ;;  %134 = vmatprep.subr.bf16.mxu0 %v168_v3  ;;  %131 = vmatprep.mubr.msk.f32.mxu0 %vm169_vm0, %v170_v6 }
   0x2   :  { %v135_v4 = vpack.c.bf16 %v17_v1, %v16_v0  ;;  %v19_v5 = vld [vmem:[%s223_s1 + $0x18] sm:$0xff] }
   0x3   :  { %8 = vsyncpa [#allocation3], 0  ;;  %v138_v7 = vpack.c.bf16 %v19_v5, %v18_v2  ;;  %v15_v8 = vld [vmem:[%s222_s0] sm:$0xff]  ;;  %vm27_vm1 = vcmask 261120   ;;  %s171_s24 = smov [#allocation2]  }
   0x4   :  { %136 = vmatpush3.bf16.msra.mxu0 %v135_v4  ;;  %v116_v9 = vld [vmem:[%s224_s2] ss:$0 sm:$0xff]  ;;  %s108_s1 = sshll.u32 %s171_s24, 4  ;;  %s109_s1 = int_to_ptr.vmem [resolvable:$true] %s108_s1 }
   0x5   :  { %137 = vmatprep.subr.bf16.mxu0 %v168_v3  ;;  %s144_s25 = scalar_lea.vmem %s109_s1, 128  ;;  %p149_p1 = scmp.lt.s32.totalorder %s109_s1, %s109_s1 }
   0x6   :  { %p145_p0 = scmp.ne.s32.totalorder %s109_s1, %s144_s25  ;;  %p150_p2 = scmp.lt.s32.totalorder %s144_s25, %s144_s25 }
   0x8   :  { %139 = vmatpush3.bf16.msra.mxu0 %v138_v7  ;;  %p151_p3 = por %p150_p2, %p149_p1 }
   0xa   :  { %p152_p4 = pnand %p151_p3, %p145_p0 }
   0xb   :  { %132 = vmatmul.mubr.msk.f32.vlgmr.msra.gmra.mrb[0].mxu0 %vm27_vm1, %v15_v8 }
  0xde   :  { %v97_v10 = vpop.f32.mrb[0].mxu0 }
  0xdf   :  { %v98_v11 = vadd.f32 %v116_v9, %v97_v10  ;;  %v133_v12 = vpop.f32.mrb[1].mxu0 }
  0xe1   :  { %101 = vst [vmem:[#allocation2] sm:$0xff] %v98_v11 }
  0xe2   :  { %155 = shalt.err (!%p152_p4)
}
  0xe3   :  { %s156_s27 = scalar_lea.hbm %s225_s3, 128 }
  0xe4   :  { %p157_p5 = scmp.ne.s32.totalorder %s225_s3, %s156_s27  ;;  %p160_p6 = scmp.lt.u32.totalorder %s156_s27, %s225_s3 }
  0xe6   :  { %p162_p7 = pnand %p160_p6, %p157_p5 }
  0xe8   :  { %165 = shalt.err (!%p162_p7)
}
  0xe9   :  { %111 = dma.vmem_to_hbm [thread:$0]  %s109_s1, 128, %s225_s3, [#allocation3]  }
  0xea   :  { %166 = dma.done.wait [#allocation3], 128  }
  0xeb   :  { %167 = vsyncadd [#allocation3], 4294967168 }
  0xec   :  { %115 = vsyncpa [#allocation3], 1 }

</bundles_post_ra>
